<compile_context>
chip_gen: v7x
topology: tpu7x:2x2x1
jax: 0.10.0
libtpu: 0.0.40
codegen_flags: <defaults>
</compile_context>

<pallas_src>
import functools

import jax
import jax.numpy as jnp
from jax import lax
from jax.experimental import pallas as pl
from jax.experimental.pallas import tpu as pltpu


def _round_up(x, m):
    return pl.cdiv(x, m) * m


def _gelu(x):
    return jax.nn.gelu(x, approximate=True)


# -----------------------------------------------------------------------------
# Pallas kernel 1: tiled MXU matmul with fused per-channel epilogue
#   out = act((a @ b) * scale + shift), bf16 inputs, f32 accumulation.
# -----------------------------------------------------------------------------
def _matmul_kernel(a_ref, b_ref, s_ref, t_ref, o_ref, acc_ref, *, activation):
    @pl.when(pl.program_id(2) == 0)
    def _():
        acc_ref[...] = jnp.zeros_like(acc_ref)

    acc_ref[...] += jnp.dot(a_ref[...], b_ref[...],
                            preferred_element_type=jnp.float32)

    @pl.when(pl.program_id(2) == pl.num_programs(2) - 1)
    def _():
        y = acc_ref[...] * s_ref[...] + t_ref[...]
        if activation == "gelu":
            y = _gelu(y)
        elif activation == "silu":
            y = y * jax.nn.sigmoid(y)
        elif activation == "sigmoid":
            y = jax.nn.sigmoid(y)
        o_ref[...] = y.astype(o_ref.dtype)


def matmul(a, b, *, scale=None, shift=None, activation=None,
           out_dtype=jnp.float32, tm=256, tn=512, tk=512):
    """a: (M, K) @ b: (K, N) -> act((a@b)*scale + shift), shape (M, N)."""
    M, K = a.shape
    K2, N = b.shape
    assert K == K2
    a = a.astype(jnp.bfloat16)
    b = b.astype(jnp.bfloat16)
    s = jnp.ones((N,), jnp.float32) if scale is None else scale.astype(jnp.float32)
    t = jnp.zeros((N,), jnp.float32) if shift is None else shift.astype(jnp.float32)
    tm = min(tm, _round_up(M, 16))
    tn = min(tn, _round_up(N, 128))
    tk = min(tk, _round_up(K, 128))
    Mp, Kp, Np = _round_up(M, tm), _round_up(K, tk), _round_up(N, tn)
    a_p = a if (Mp == M and Kp == K) else jnp.pad(a, ((0, Mp - M), (0, Kp - K)))
    b_p = b if (Kp == K and Np == N) else jnp.pad(b, ((0, Kp - K), (0, Np - N)))
    s_p = (s if Np == N else jnp.pad(s, (0, Np - N))).reshape(1, Np)
    t_p = (t if Np == N else jnp.pad(t, (0, Np - N))).reshape(1, Np)
    kern = functools.partial(_matmul_kernel, activation=activation)
    out = pl.pallas_call(
        kern,
        out_shape=jax.ShapeDtypeStruct((Mp, Np), out_dtype),
        grid_spec=pltpu.PrefetchScalarGridSpec(
            num_scalar_prefetch=0,
            grid=(Mp // tm, Np // tn, Kp // tk),
            in_specs=[pl.BlockSpec((tm, tk), lambda i, j, k: (i, k)),
                      pl.BlockSpec((tk, tn), lambda i, j, k: (k, j)),
                      pl.BlockSpec((1, tn), lambda i, j, k: (0, j)),
                      pl.BlockSpec((1, tn), lambda i, j, k: (0, j))],
            out_specs=pl.BlockSpec((tm, tn), lambda i, j, k: (i, j)),
            scratch_shapes=[pltpu.VMEM((tm, tn), jnp.float32)]),
        compiler_params=pltpu.CompilerParams(
            dimension_semantics=("parallel", "parallel", "arbitrary")),
    )(a_p, b_p, s_p, t_p)
    if Mp != M or Np != N:
        out = out[:M, :N]
    return out


# -----------------------------------------------------------------------------
# Pallas kernel 2: LayerNorm over last dim, tiled over rows (bf16 I/O option)
# -----------------------------------------------------------------------------
def _layernorm_kernel(x_ref, g_ref, b_ref, o_ref):
    x = x_ref[...].astype(jnp.float32)
    mean = jnp.mean(x, axis=-1, keepdims=True)
    var = jnp.mean(jnp.square(x - mean), axis=-1, keepdims=True)
    y = (x - mean) * lax.rsqrt(var + 1e-5)
    o_ref[...] = (y * g_ref[...] + b_ref[...]).astype(o_ref.dtype)


def layernorm(x2d, gamma, beta, out_dtype=None, tm=512):
    N, D = x2d.shape
    out_dtype = x2d.dtype if out_dtype is None else out_dtype
    tm = min(tm, _round_up(N, 8))
    Np = _round_up(N, tm)
    xp = x2d if Np == N else jnp.pad(x2d, ((0, Np - N), (0, 0)))
    out = pl.pallas_call(
        _layernorm_kernel,
        out_shape=jax.ShapeDtypeStruct((Np, D), out_dtype),
        grid=(Np // tm,),
        in_specs=[pl.BlockSpec((tm, D), lambda i: (i, 0)),
                  pl.BlockSpec((1, D), lambda i: (0, 0)),
                  pl.BlockSpec((1, D), lambda i: (0, 0))],
        out_specs=pl.BlockSpec((tm, D), lambda i: (i, 0)),
        compiler_params=pltpu.CompilerParams(
            dimension_semantics=("parallel",)),
    )(xp,
      gamma.astype(jnp.float32).reshape(1, D),
      beta.astype(jnp.float32).reshape(1, D))
    return out if Np == N else out[:N]


# -----------------------------------------------------------------------------
# Pallas kernel 3: depthwise 3x3 conv, fused  gelu(conv(x)*scale + shift)
#   - value (no scratch RMW) f32 accumulation, bf16 taps
#   - row-tiled grid; the 2-row (stride 1) / 1-row (stride 2) halo is obtained
#     by passing the same array twice with row-block index i and i+1
#   - stride 2 uses an even/odd phase decomposition built in glue so the kernel
#     only performs dense reads and computes exactly the kept outputs
# -----------------------------------------------------------------------------
def _dwconv_s1_kernel(xa_ref, xb_ref, w_ref, s_ref, t_ref, o_ref):
    _, th, Wp, C = xa_ref.shape
    Wo = Wp - 2
    xt = jnp.concatenate([xa_ref[0], xb_ref[0, pl.ds(0, 2)]], axis=0)  # (th+2, Wp, C)
    w = w_ref[...].astype(jnp.float32)                                  # (3, 3, C)
    acc = jnp.zeros((th, Wo, C), jnp.float32)
    for di in range(3):
        for dj in range(3):
            tap = xt[di:di + th, dj:dj + Wo, :].astype(jnp.float32)
            acc = acc + tap * w[di, dj].reshape(1, 1, C)
    y = _gelu(acc * s_ref[...] + t_ref[...])
    o_ref[0] = y.astype(o_ref.dtype)


def _dwconv_s2_kernel(pa_ref, pb_ref, w_ref, s_ref, t_ref, o_ref):
    _, _, th, Wq, C = pa_ref.shape
    Wo = Wq - 1
    w = w_ref[...].astype(jnp.float32)

    def rows_with_halo(ph):   # phases 0/1 (even input row parity) need 1 extra row
        return jnp.concatenate([pa_ref[0, ph], pb_ref[0, ph, pl.ds(0, 1)]], axis=0)

    xt = [rows_with_halo(0), rows_with_halo(1), pa_ref[0, 2], pa_ref[0, 3]]
    acc = jnp.zeros((th, Wo, C), jnp.float32)
    for di in range(3):
        for dj in range(3):
            ph = (di % 2) * 2 + (dj % 2)
            ri, cj = di // 2, dj // 2
            tap = xt[ph][ri:ri + th, cj:cj + Wo, :].astype(jnp.float32)
            acc = acc + tap * w[di, dj].reshape(1, 1, C)
    y = _gelu(acc * s_ref[...] + t_ref[...])
    o_ref[0] = y.astype(o_ref.dtype)


def dwconv3x3(x, w, scale, shift, *, stride, row_tile=64,
              out_dtype=jnp.bfloat16):
    """x: (B, H, W, C), w: (3, 3, C).  Returns gelu(dwconv(x)*scale + shift)."""
    B, H, W, C = x.shape
    s = scale.astype(jnp.float32).reshape(1, 1, C)
    t = shift.astype(jnp.float32).reshape(1, 1, C)
    w = w.astype(jnp.float32)
    sem = pltpu.CompilerParams(dimension_semantics=("parallel", "parallel"))

    if stride == 1:
        Ho, Wo, Wp = H, W, W + 2
        th = min(row_tile, Ho)
        nt = pl.cdiv(Ho, th)
        rows = (nt + 1) * th
        assert rows >= H + 2, "row tile too small for the 3x3 halo"
        xpad = jnp.pad(x, ((0, 0), (1, rows - (H + 1)), (1, 1), (0, 0)))
        out = pl.pallas_call(
            _dwconv_s1_kernel,
            out_shape=jax.ShapeDtypeStruct((B, nt * th, Wo, C), out_dtype),
            grid=(B, nt),
            in_specs=[pl.BlockSpec((1, th, Wp, C), lambda b, i: (b, i, 0, 0)),
                      pl.BlockSpec((1, th, Wp, C), lambda b, i: (b, i + 1, 0, 0)),
                      pl.BlockSpec((3, 3, C), lambda b, i: (0, 0, 0)),
                      pl.BlockSpec((1, 1, C), lambda b, i: (0, 0, 0)),
                      pl.BlockSpec((1, 1, C), lambda b, i: (0, 0, 0))],
            out_specs=pl.BlockSpec((1, th, Wo, C), lambda b, i: (b, i, 0, 0)),
            compiler_params=sem,
        )(xpad, xpad, w, s, t)
        return out[:, :Ho]

    # stride == 2: 4 even/odd phases of the padded input (glue), dense kernel.
    Ho, Wo = (H - 1) // 2 + 1, (W - 1) // 2 + 1
    th = min(row_tile, Ho)
    nt = pl.cdiv(Ho, th)
    xpad = jnp.pad(x, ((0, 0), (1, 1 + (H % 2)), (1, 1 + (W % 2)), (0, 0)))
    Hq, Wq = Ho + 1, Wo + 1
    phases = jnp.stack(
        [xpad[:, p:p + 2 * Ho + 1:2, q:q + 2 * Wo + 1:2, :]
         for p in (0, 1) for q in (0, 1)], axis=1)              # (B, 4, Hq, Wq, C)
    rows = (nt + 1) * th
    phases = jnp.pad(phases, ((0, 0), (0, 0), (0, rows - Hq), (0, 0), (0, 0)))
    out = pl.pallas_call(
        _dwconv_s2_kernel,
        out_shape=jax.ShapeDtypeStruct((B, nt * th, Wo, C), out_dtype),
        grid=(B, nt),
        in_specs=[pl.BlockSpec((1, 4, th, Wq, C), lambda b, i: (b, 0, i, 0, 0)),
                  pl.BlockSpec((1, 4, th, Wq, C), lambda b, i: (b, 0, i + 1, 0, 0)),
                  pl.BlockSpec((3, 3, C), lambda b, i: (0, 0, 0)),
                  pl.BlockSpec((1, 1, C), lambda b, i: (0, 0, 0)),
                  pl.BlockSpec((1, 1, C), lambda b, i: (0, 0, 0))],
        out_specs=pl.BlockSpec((1, th, Wo, C), lambda b, i: (b, i, 0, 0)),
        compiler_params=sem,
    )(phases, phases, w, s, t)
    return out[:, :Ho]


# -----------------------------------------------------------------------------
# Pallas kernel 4: direct 3x3 conv (stride 1) — 9 tap matmuls, no im2col blowup
# -----------------------------------------------------------------------------
def _conv3x3_kernel(x_ref, w_ref, b_ref, o_ref):
    _, Ho, Wo, Cout = o_ref.shape
    Cin = x_ref.shape[-1]
    acc = jnp.zeros((Ho * Wo, Cout), jnp.float32)
    for di in range(3):
        for dj in range(3):
            tap = x_ref[0, pl.ds(di, Ho), pl.ds(dj, Wo), :].astype(jnp.bfloat16)
            tap = tap.reshape(Ho * Wo, Cin)
            acc = acc + jnp.dot(tap, w_ref[di, dj].astype(jnp.bfloat16),
                                preferred_element_type=jnp.float32)
    y = acc + b_ref[...].astype(jnp.float32)
    o_ref[0] = y.reshape(Ho, Wo, Cout).astype(o_ref.dtype)


def conv3x3_direct(x, w, b, out_dtype=jnp.bfloat16):
    """Full 3x3 conv, padding=1, stride=1, NHWC.  w: (3, 3, Cin, Cout)."""
    B, H, W, Cin = x.shape
    Cout = w.shape[-1]
    xpad = jnp.pad(x, ((0, 0), (1, 1), (1, 1), (0, 0)))
    # TODO(synk): row-tile like dwconv3x3 for very large stem resolutions.
    return pl.pallas_call(
        _conv3x3_kernel,
        out_shape=jax.ShapeDtypeStruct((B, H, W, Cout), out_dtype),
        grid=(B,),
        in_specs=[pl.BlockSpec((1, H + 2, W + 2, Cin), lambda bi: (bi, 0, 0, 0)),
                  pl.BlockSpec((3, 3, Cin, Cout), lambda bi: (0, 0, 0, 0)),
                  pl.BlockSpec((1, Cout), lambda bi: (0, 0))],
        out_specs=pl.BlockSpec((1, H, W, Cout), lambda bi: (bi, 0, 0, 0)),
        compiler_params=pltpu.CompilerParams(dimension_semantics=("parallel",)),
    )(xpad, w, b.astype(jnp.float32).reshape(1, Cout))


# -----------------------------------------------------------------------------
# Pallas kernel 5: fused window attention
#   lane-dense (Wt, n, 3*d) qkv input, in-kernel head gather (pl.ds), batched
#   bf16 einsums with f32 accumulation, f32 softmax, (Wt, n, h*dh) writeback.
# -----------------------------------------------------------------------------
def _attn_kernel(qkv_ref, bias_ref, o_ref, *, scale, heads, dim_head):
    Wt, n, _ = qkv_ref.shape
    h, dh = heads, dim_head
    d = h * dh

    def gather_heads(base):            # -> (Wt*h, n, dh) bf16
        parts = [qkv_ref[:, :, pl.ds(base + j * dh, dh)] for j in range(h)]
        return jnp.stack(parts, axis=1).reshape(Wt * h, n, dh).astype(jnp.bfloat16)

    q = gather_heads(0)
    k = gather_heads(d)
    v = gather_heads(2 * d)

    sim = jnp.einsum('bid,bjd->bij', q, k,
                     preferred_element_type=jnp.float32) * scale
    bias = bias_ref[...].astype(jnp.float32)                     # (h, n, n)
    sim = (sim.reshape(Wt, h, n, n) + bias[None]).reshape(Wt * h, n, n)
    sim = sim - jnp.max(sim, axis=-1, keepdims=True)
    p = jnp.exp(sim)
    inv = pl.reciprocal(jnp.sum(p, axis=-1, keepdims=True), approx=True)
    out = jnp.einsum('bij,bjd->bid', (p * inv).astype(jnp.bfloat16), v,
                     preferred_element_type=jnp.float32)         # (Wt*h, n, dh)
    out = out.reshape(Wt, h, n, dh)
    merged = jnp.concatenate([out[:, j] for j in range(h)], axis=-1)
    o_ref[...] = merged.astype(o_ref.dtype)


def window_attention(qkv, bias, *, scale, heads, dim_head, wtile=64):
    """qkv: (BW, n, 3*d); bias: (h, n, n) -> (BW, n, h*dh) bf16."""
    BW, n, _ = qkv.shape
    d = heads * dim_head
    # keep >=2 grid steps so both v7x TensorCores stay busy on small batches
    Wt = max(1, min(wtile, (BW + 1) // 2))
    BWp = _round_up(BW, Wt)
    if BWp != BW:
        qkv = jnp.pad(qkv, ((0, BWp - BW), (0, 0), (0, 0)))
    kern = functools.partial(_attn_kernel, scale=scale, heads=heads,
                             dim_head=dim_head)
    out = pl.pallas_call(
        kern,
        out_shape=jax.ShapeDtypeStruct((BWp, n, d), jnp.bfloat16),
        grid=(BWp // Wt,),
        in_specs=[pl.BlockSpec((Wt, n, 3 * d), lambda i: (i, 0, 0)),
                  pl.BlockSpec((heads, n, n), lambda i: (0, 0, 0))],
        out_specs=pl.BlockSpec((Wt, n, d), lambda i: (i, 0, 0)),
        compiler_params=pltpu.CompilerParams(
            dimension_semantics=("parallel",)),
    )(qkv, bias)
    return out if BWp == BW else out[:BW]


# -----------------------------------------------------------------------------
# JAX glue (reshapes, padding, window (un)partitioning)
# -----------------------------------------------------------------------------
_BN_EPS = 1e-5


def _bn_fold(gamma, beta, bias=None):
    """Fresh-init eval BatchNorm (running_mean=0, running_var=1) folded into a
    per-channel (scale, shift) pair applied after the preceding matmul/conv."""
    s = gamma.astype(jnp.float32) * (1.0 / jnp.sqrt(1.0 + _BN_EPS))
    t = beta.astype(jnp.float32)
    if bias is not None:
        t = t + bias.astype(jnp.float32) * s
    return s, t


def conv3x3_im2col(x, w, b, stride, out_dtype=jnp.bfloat16):
    """3x3 conv via im2col + fused matmul.  Only used for the tiny 3-channel
    stride-2 stem conv (9*Cin = 27 channels, negligible blow-up)."""
    B, H, W, Cin = x.shape
    Cout = w.shape[-1]
    xp = jnp.pad(x, ((0, 0), (1, 1), (1, 1), (0, 0)))
    Ho = (H + 2 - 3) // stride + 1
    Wo = (W + 2 - 3) // stride + 1
    cols = []
    for di in range(3):
        for dj in range(3):
            cols.append(lax.slice(
                xp, (0, di, dj, 0),
                (B, di + (Ho - 1) * stride + 1, dj + (Wo - 1) * stride + 1, Cin),
                strides=(1, stride, stride, 1)))
    patches = jnp.concatenate(cols, axis=-1)                    # (B, Ho, Wo, 9*Cin)
    out = matmul(patches.reshape(-1, 9 * Cin), w.reshape(9 * Cin, Cout),
                 shift=b, out_dtype=out_dtype)
    return out.reshape(B, Ho, Wo, Cout)


def block_partition(x, w):   # 'b d (x w1) (y w2) -> b x y w1 w2 d' (NHWC)
    B, H, W, D = x.shape
    X, Y = H // w, W // w
    return jnp.transpose(x.reshape(B, X, w, Y, w, D), (0, 1, 3, 2, 4, 5))


def block_unpartition(x6):
    B, X, Y, w1, w2, D = x6.shape
    return jnp.transpose(x6, (0, 1, 3, 2, 4, 5)).reshape(B, X * w1, Y * w2, D)


def grid_partition(x, w):    # 'b d (w1 x) (w2 y) -> b x y w1 w2 d'
    B, H, W, D = x.shape
    X, Y = H // w, W // w
    return jnp.transpose(x.reshape(B, w, X, w, Y, D), (0, 2, 4, 1, 3, 5))


def grid_unpartition(x6):
    B, X, Y, w1, w2, D = x6.shape
    return jnp.transpose(x6, (0, 3, 1, 4, 2, 5)).reshape(B, w1 * X, w2 * Y, D)


def rel_pos_indices(w):
    pos = jnp.arange(w)
    gi, gj = jnp.meshgrid(pos, pos, indexing='ij')
    grid = jnp.stack([gi.reshape(-1), gj.reshape(-1)], axis=-1)     # (n, 2)
    rel = grid[:, None, :] - grid[None, :, :] + (w - 1)
    return rel[..., 0] * (2 * w - 1) + rel[..., 1]                  # (n, n)


# -----------------------------------------------------------------------------
# Module forward passes
# -----------------------------------------------------------------------------
def mbconv_forward(x, p, downsample):
    B, H, W, Cin = x.shape
    hidden = p['w_pw1'].shape[1]
    dim_out = p['w_pw2'].shape[1]
    stride = 2 if downsample else 1

    # 1x1 expand + BN + GELU (fused epilogue, bf16 out)
    s1, t1 = _bn_fold(p['bn1_g'], p['bn1_b'], p['b_pw1'])
    h1 = matmul(x.reshape(-1, Cin), p['w_pw1'], scale=s1, shift=t1,
                activation='gelu', out_dtype=jnp.bfloat16).reshape(B, H, W, hidden)

    # depthwise 3x3 (+ bias) + BN + GELU fused, strided in-kernel
    s2, t2 = _bn_fold(p['bn2_g'], p['bn2_b'], p['b_dw'])
    h2 = dwconv3x3(h1, p['w_dw'], s2, t2, stride=stride)             # bf16

    # squeeze-excitation (fused SiLU / Sigmoid epilogues)
    pooled = jnp.mean(h2.astype(jnp.float32), axis=(1, 2))           # (B, hidden)
    g = matmul(pooled, p['w_se1'], activation='silu', out_dtype=jnp.float32)
    g = matmul(g, p['w_se2'], activation='sigmoid', out_dtype=jnp.float32)
    h2 = h2 * g.astype(jnp.bfloat16)[:, None, None, :]

    # 1x1 project + BN (fused epilogue)
    Ho, Wo = h2.shape[1], h2.shape[2]
    s3, t3 = _bn_fold(p['bn3_g'], p['bn3_b'], p['b_pw2'])
    out = matmul(h2.reshape(-1, hidden), p['w_pw2'], scale=s3, shift=t3,
                 out_dtype=jnp.float32).reshape(B, Ho, Wo, dim_out)

    if (Cin == dim_out) and (not downsample):
        out = out + x          # Dropsample(prob=dropout) is identity in eval
    return out


def attention_forward(x6, p, dim_head, window_size):
    b, gx, gy, w1, w2, d = x6.shape
    h = d // dim_head
    n = w1 * w2
    BW = b * gx * gy
    qkv = matmul(x6.reshape(BW * n, d), p['w_qkv'], out_dtype=jnp.bfloat16)
    qkv = qkv.reshape(BW, n, 3 * d)
    idx = rel_pos_indices(window_size)
    bias = jnp.transpose(p['rel_bias_table'][idx], (2, 0, 1)).astype(jnp.float32)
    out = window_attention(qkv, bias, scale=float(dim_head) ** -0.5,
                           heads=h, dim_head=dim_head)              # (BW, n, d)
    out = matmul(out.reshape(BW * n, d), p['w_out'], out_dtype=jnp.float32)
    return out.reshape(b, gx, gy, w1, w2, d)


def prenorm_attn(x6, p, dim_head, window_size):
    d = x6.shape[-1]
    xn = layernorm(x6.reshape(-1, d), p['ln_g'], p['ln_b'],
                   out_dtype=jnp.bfloat16).reshape(x6.shape)
    return attention_forward(xn, p, dim_head, window_size) + x6


def prenorm_ff(x6, p):
    shape = x6.shape
    d = shape[-1]
    xn = layernorm(x6.reshape(-1, d), p['ln_g'], p['ln_b'],
                   out_dtype=jnp.bfloat16)
    h = matmul(xn, p['w1'], shift=p['b1'], activation='gelu',
               out_dtype=jnp.bfloat16)
    out = matmul(h, p['w2'], shift=p['b2'], out_dtype=jnp.float32)
    return out.reshape(shape) + x6


def maxvit_forward(params, x_nchw, *, window_size, dim_head):
    # layout: accept NCHW (PyTorch), run internally in NHWC.
    x = jnp.transpose(x_nchw, (0, 2, 3, 1)).astype(jnp.float32)
    x = conv3x3_im2col(x, params['stem']['w1'], params['stem']['b1'], stride=2)
    x = conv3x3_direct(x, params['stem']['w2'], params['stem']['b2'])

    for blk in params['blocks']:
        x = mbconv_forward(x, blk['mbconv'], downsample=blk['downsample'])
        # block (window) attention
        x6 = block_partition(x, window_size)
        x6 = prenorm_attn(x6, blk['block_attn'], dim_head, window_size)
        x6 = prenorm_ff(x6, blk['block_ff'])
        x = block_unpartition(x6)
        # grid attention
        x6 = grid_partition(x, window_size)
        x6 = prenorm_attn(x6, blk['grid_attn'], dim_head, window_size)
        x6 = prenorm_ff(x6, blk['grid_ff'])
        x = grid_unpartition(x6)

    pooled = jnp.mean(x, axis=(1, 2))                      # 'b d h w -> b d'
    pooled = layernorm(pooled, params['head']['ln_g'], params['head']['ln_b'])
    return matmul(pooled, params['head']['w'], shift=params['head']['b'],
                  out_dtype=jnp.float32)


# -----------------------------------------------------------------------------
# Deterministic parameter initialization (shapes mirror the PyTorch __init__).
# Large matmul weights are stored in bf16 once at init (no per-call cast pass).
# -----------------------------------------------------------------------------
def init_maxvit_params(key, *, num_classes, dim, depth, dim_head, window_size,
                       mbconv_expansion_rate, mbconv_shrinkage_rate, channels,
                       dim_conv_stem=None):
    dim_conv_stem = dim if dim_conv_stem is None else dim_conv_stem
    keys = list(jax.random.split(key, 4096))
    ctr = [0]

    def nrm(shape, scale=0.02, dtype=jnp.float32):
        k = keys[ctr[0]]
        ctr[0] += 1
        return (scale * jax.random.normal(k, shape, jnp.float32)).astype(dtype)

    bf16 = jnp.bfloat16

    def init_mbconv(dim_in, dim_out):
        hidden = int(mbconv_expansion_rate * dim_out)
        sh = int(hidden * mbconv_shrinkage_rate)
        return {
            'w_pw1': nrm((dim_in, hidden), dtype=bf16), 'b_pw1': nrm((hidden,)),
            'bn1_g': jnp.ones((hidden,), jnp.float32),
            'bn1_b': jnp.zeros((hidden,), jnp.float32),
            'w_dw': nrm((3, 3, hidden)), 'b_dw': nrm((hidden,)),
            'bn2_g': jnp.ones((hidden,), jnp.float32),
            'bn2_b': jnp.zeros((hidden,), jnp.float32),
            'w_se1': nrm((hidden, sh), dtype=bf16),
            'w_se2': nrm((sh, hidden), dtype=bf16),
            'w_pw2': nrm((hidden, dim_out), dtype=bf16), 'b_pw2': nrm((dim_out,)),
            'bn3_g': jnp.ones((dim_out,), jnp.float32),
            'bn3_b': jnp.zeros((dim_out,), jnp.float32),
        }

    def init_attn(d):
        h = d // dim_head
        return {
            'ln_g': jnp.ones((d,), jnp.float32),
            'ln_b': jnp.zeros((d,), jnp.float32),
            'w_qkv': nrm((d, 3 * d), dtype=bf16),
            'w_out': nrm((d, d), dtype=bf16),
            'rel_bias_table': nrm(((2 * window_size - 1) ** 2, h)),
        }

    def init_ff(d):
        inner = int(d * 4)
        return {
            'ln_g': jnp.ones((d,), jnp.float32),
            'ln_b': jnp.zeros((d,), jnp.float32),
            'w1': nrm((d, inner), dtype=bf16), 'b1': nrm((inner,)),
            'w2': nrm((inner, d), dtype=bf16), 'b2': nrm((d,)),
        }

    params = {
        'stem': {
            'w1': nrm((3, 3, channels, dim_conv_stem), dtype=bf16),
            'b1': nrm((dim_conv_stem,)),
            'w2': nrm((3, 3, dim_conv_stem, dim_conv_stem), dtype=bf16),
            'b2': nrm((dim_conv_stem,)),
        }
    }

    num_stages = len(depth)
    dims = (dim_conv_stem,) + tuple(2 ** i * dim for i in range(num_stages))
    dim_pairs = tuple(zip(dims[:-1], dims[1:]))

    blocks = []
    for (layer_dim_in, layer_dim), layer_depth in zip(dim_pairs, depth):
        for stage_ind in range(layer_depth):
            is_first = stage_ind == 0
            stage_dim_in = layer_dim_in if is_first else layer_dim
            blocks.append({
                'downsample': is_first,
                'mbconv': init_mbconv(stage_dim_in, layer_dim),
                'block_attn': init_attn(layer_dim),
                'block_ff': init_ff(layer_dim),
                'grid_attn': init_attn(layer_dim),
                'grid_ff': init_ff(layer_dim),
            })
    params['blocks'] = blocks

    params['head'] = {
        'ln_g': jnp.ones((dims[-1],), jnp.float32),
        'ln_b': jnp.zeros((dims[-1],), jnp.float32),
        'w': nrm((dims[-1], num_classes), dtype=bf16),
        'b': nrm((num_classes,)),
    }
    return params


# -----------------------------------------------------------------------------
if __name__ == "__main__":
    # TODO(synk): dropout / Dropsample / BatchNorm running-stat updates are
    # training-only; this implements the eval-mode forward (they are identities).
    # depth=(2, 1) exercises both the downsample (stride-2 dw) and the residual
    # (stride-1 dw) MBConv paths.
    cfg = dict(num_classes=10, dim=32, depth=(2, 1), dim_head=16,
               window_size=4, mbconv_expansion_rate=4,
               mbconv_shrinkage_rate=0.25, channels=3)

    key = jax.random.PRNGKey(0)
    kp, kx = jax.random.split(key)
    params = init_maxvit_params(kp, **cfg)

    # NCHW input (PyTorch convention): 32x32 image keeps the spatial dims
    # divisible by window_size=4 through both downsampling stages.
    x = jax.random.normal(kx, (2, cfg['channels'], 32, 32), dtype=jnp.float32)

    logits = maxvit_forward(params, x,
                            window_size=cfg['window_size'],
                            dim_head=cfg['dim_head'])
    logits = jax.block_until_ready(logits)
    assert logits.shape == (2, cfg['num_classes'])
    assert bool(jnp.all(jnp.isfinite(logits)))
    print("KERNEL_OK")
</pallas_src>

<mosaic_0001>
module attributes {stable_mosaic.version = 11 : i64} {
  func.func @_matmul_kernel(%arg0: i32, %arg1: i32, %arg2: i32, %arg3: memref<256x128xbf16, #tpu.memory_space<vmem>>, %arg4: memref<128x128xbf16, #tpu.memory_space<vmem>>, %arg5: memref<1x128xf32, #tpu.memory_space<vmem>>, %arg6: memref<1x128xf32, #tpu.memory_space<vmem>>, %arg7: memref<256x128xbf16, #tpu.memory_space<vmem>>, %arg8: memref<256x128xf32, #tpu.memory_space<vmem>>) attributes {dimension_semantics = [#tpu.dimension_semantics<parallel>, #tpu.dimension_semantics<parallel>, #tpu.dimension_semantics<arbitrary>], iteration_bounds = array<i64: 2, 1, 1>, scalar_prefetch = 0 : i64, scratch_operands = 1 : i64, tpu.core_type = #tpu.core_type<tc>, window_params = [{transform_indices = @transform_0, window_bounds = array<i64: 256, 128>}, {transform_indices = @transform_1, window_bounds = array<i64: 128, 128>}, {transform_indices = @transform_2, window_bounds = array<i64: 1, 128>}, {transform_indices = @transform_3, window_bounds = array<i64: 1, 128>}, {transform_indices = @transform_4, window_bounds = array<i64: 256, 128>}]} {
    %c0_i32 = arith.constant 0 : i32
    %0 = arith.cmpi eq, %arg2, %c0_i32 : i32
    %1 = arith.extui %0 : i1 to i32
    %c0_i32_0 = arith.constant 0 : i32
    %2 = arith.cmpi ne, %1, %c0_i32_0 : i32
    scf.if %2 {
      %cst_10 = arith.constant 0.000000e+00 : f32
      %12 = vector.broadcast %cst_10 : f32 to vector<256x128xf32>
      %c0_11 = arith.constant 0 : index
      %c0_12 = arith.constant 0 : index
      %13 = vector.load %arg8[%c0_11, %c0_12] : memref<256x128xf32, #tpu.memory_space<vmem>>, vector<256x128xf32>
      tpu.vector_store %arg8[%c0_11, %c0_12], %12 {strides = array<i32>} : memref<256x128xf32, #tpu.memory_space<vmem>>, vector<256x128xf32>,
    } else {
    }
    %c0 = arith.constant 0 : index
    %c0_1 = arith.constant 0 : index
    %3 = vector.load %arg8[%c0, %c0_1] : memref<256x128xf32, #tpu.memory_space<vmem>>, vector<256x128xf32>
    %c0_2 = arith.constant 0 : index
    %c0_3 = arith.constant 0 : index
    %4 = vector.load %arg3[%c0_2, %c0_3] : memref<256x128xbf16, #tpu.memory_space<vmem>>, vector<256x128xbf16>
    %c0_4 = arith.constant 0 : index
    %c0_5 = arith.constant 0 : index
    %5 = vector.load %arg4[%c0_4, %c0_5] : memref<128x128xbf16, #tpu.memory_space<vmem>>, vector<128x128xbf16>
    %cst = arith.constant dense<0.000000e+00> : vector<256x128xf32>
    %6 = tpu.matmul %4, %5, %cst {dimension_numbers = #tpu.dot_dimension_numbers<[1], [0], [0], [1], [0, 0, 1, 1], [], []>} : vector<256x128xbf16>, vector<128x128xbf16>, vector<256x128xf32> -> vector<256x128xf32>
    %7 = arith.addf %3, %6 : vector<256x128xf32>
    %c0_6 = arith.constant 0 : index
    %c0_7 = arith.constant 0 : index
    %8 = vector.load %arg8[%c0_6, %c0_7] : memref<256x128xf32, #tpu.memory_space<vmem>>, vector<256x128xf32>
    tpu.vector_store %arg8[%c0_6, %c0_7], %7 {strides = array<i32>} : memref<256x128xf32, #tpu.memory_space<vmem>>, vector<256x128xf32>,
    %c0_i32_8 = arith.constant 0 : i32
    %9 = arith.cmpi eq, %arg2, %c0_i32_8 : i32
    %10 = arith.extui %9 : i1 to i32
    %c0_i32_9 = arith.constant 0 : i32
    %11 = arith.cmpi ne, %10, %c0_i32_9 : i32
    scf.if %11 {
      %c0_10 = arith.constant 0 : index
      %c0_11 = arith.constant 0 : index
      %12 = vector.load %arg8[%c0_10, %c0_11] : memref<256x128xf32, #tpu.memory_space<vmem>>, vector<256x128xf32>
      %c0_12 = arith.constant 0 : index
      %c0_13 = arith.constant 0 : index
      %13 = vector.load %arg5[%c0_12, %c0_13] : memref<1x128xf32, #tpu.memory_space<vmem>>, vector<1x128xf32>
      %14 = vector.broadcast %13 : vector<1x128xf32> to vector<256x128xf32>
      %15 = arith.mulf %12, %14 : vector<256x128xf32>
      %c0_14 = arith.constant 0 : index
      %c0_15 = arith.constant 0 : index
      %16 = vector.load %arg6[%c0_14, %c0_15] : memref<1x128xf32, #tpu.memory_space<vmem>>, vector<1x128xf32>
      %17 = vector.broadcast %16 : vector<1x128xf32> to vector<256x128xf32>
      %18 = arith.addf %15, %17 : vector<256x128xf32>
      %19 = arith.truncf %18 : vector<256x128xf32> to vector<256x128xbf16>
      %c0_16 = arith.constant 0 : index
      %c0_17 = arith.constant 0 : index
      %20 = vector.load %arg7[%c0_16, %c0_17] : memref<256x128xbf16, #tpu.memory_space<vmem>>, vector<256x128xbf16>
      tpu.vector_store %arg7[%c0_16, %c0_17], %19 {strides = array<i32>} : memref<256x128xbf16, #tpu.memory_space<vmem>>, vector<256x128xbf16>,
    } else {
    }
    return
  }
  func.func @transform_0(%arg0: i32, %arg1: i32, %arg2: i32) -> (i32, i32) {
    %c0_i32 = arith.constant 0 : i32
    return %arg0, %arg2 : i32, i32
  }
  func.func @transform_1(%arg0: i32, %arg1: i32, %arg2: i32) -> (i32, i32) {
    %c0_i32 = arith.constant 0 : i32
    return %arg2, %arg1 : i32, i32
  }
  func.func @transform_2(%arg0: i32, %arg1: i32, %arg2: i32) -> (i32, i32) {
    %c0_i32 = arith.constant 0 : i32
    %c0_i32_0 = arith.constant 0 : i32
    return %c0_i32, %arg1 : i32, i32
  }
  func.func @transform_3(%arg0: i32, %arg1: i32, %arg2: i32) -> (i32, i32) {
    %c0_i32 = arith.constant 0 : i32
    %c0_i32_0 = arith.constant 0 : i32
    return %c0_i32, %arg1 : i32, i32
  }
  func.func @transform_4(%arg0: i32, %arg1: i32, %arg2: i32) -> (i32, i32) {
    %c0_i32 = arith.constant 0 : i32
    return %arg0, %arg1 : i32, i32
  }
}

</mosaic_0001>

<bundles_post_ra>
// kernel: tpu_custom_call.1
= control target key start
LH: loop header
LB: loop body
LE: loop exit
PB: predicated region body
PF: predicated region fallthrough
CT: control target
= control target key end

     0   :  { %9 = vsyncpa [#allocation4], 0  ;;  %s2110_s0 = inlined_call_operand.hbm [shape: bf16[512,128], index: 0, kind: input, shape index: {}]   ;;  %s2111_s1 = inlined_call_operand.hbm [shape: bf16[128,128], index: 1, kind: input, shape index: {}]   ;;  %s2112_s2 = inlined_call_operand.vmem [shape: f32[1,128], index: 2, kind: input, shape index: {}]   ;;  %s2113_s3 = inlined_call_operand.vmem [shape: f32[1,128], index: 3, kind: input, shape index: {}]   ;;  %s2114_s4 = inlined_call_operand.hbm [shape: bf16[512,128], index: 4, kind: output, shape index: {}]  }
   0x1   :  { %11 = vsyncpa [#allocation4 + $0x1], 0 }
   0x2   :  { %12 = vsyncpa [#allocation7], 0 }
   0x3   :  { %13 = vsyncpa [#allocation5], 0 }
   0x4   :  { %15 = vsyncpa [#allocation5 + $0x1], 0  ;;  %s1770_s15 = smov 0   ;;  %s1772_s16 = smov 0  }
   0x5   :  { %s1774_s17 = smov 0   ;;  %s1776_s18 = smov 0  }
   0x6   :  { %s1778_s19 = smov 0   ;;  %s1780_s20 = smov 0  }
   0x7 LB: > { %s1197_s21 = sadd.s32 4294967295, %s1736_s20   ;;  %s1198_s22 = sadd.s32 4294967294, %s1736_s20   ;;  %s1736_s20 = sphi %s1780_s20, %s21_s20   ;;  %s1732_s19 = sphi %s1778_s19, %s2138_s19   ;;  %s1728_s18 = sphi %s1776_s18, %s2137_s18   ;;  %s1724_s17 = sphi %s1774_s17, %s2136_s17   ;;  %s1720_s16 = sphi %s1772_s16, %s2135_s16   ;;  %s1716_s15 = sphi %s1770_s15, %s2134_s15  }
   0x8   : > { %p62_p0 = scmp.ne.s32.totalorder %s1720_s16, %s1716_s15  ;;  %p1804_p1 = scmp.eq.s32.totalorder %s1197_s21, 0 }
   0x9   : > { %p1808_p2 = scmp.eq.s32.totalorder %s1197_s21, 1  ;;  %p174_p3 = scmp.eq.s32.totalorder %s1198_s22, 1 }
   0xa   : > { %s2119_s23 = scalar_select %p1804_p1, 1, 0 }
   0xb   : > { %s2120_s24 = scalar_select %p1808_p2, 1, 0 }
   0xc   : > { %p1814_p4 = por %p1804_p1, %p62_p0  ;;  %p1199_p5 = scmp.ge.s32.totalorder %s1736_s20, 1 }
   0xd   : > { %p1819_p6 = por %p174_p3, %p62_p0  ;;  %p181_p7 = scmp.lt.s32.totalorder %s1736_s20, 3 }
   0xe   : > { %s2121_s25 = scalar_select %p1814_p4, 1, 0 }
   0xf   : > { %s2122_s26 = scalar_select %p1819_p6, 1, 0 }
  0x10   : > { %p1824_p8 = pnand %p1199_p5, %p181_p7  ;;  %s1738_s28 = smov [#allocation6]  }
  0x11   : > { %s197_s29 = sshll.u32 %s1738_s28, 4  ;;  %s40_s5 = sadd.s32 1, %s1732_s19  ;;  %s198_s29 = int_to_ptr.vmem [resolvable:$true] %s197_s29 }
  0x12   : > { %s2123_s27 = scalar_select %p1824_p8, 1, 0 }
  0x13   : > { %p1499_p9 = pneg %p1824_p8  ;;  %s1592_s8 = scalar_lea.hbm %s2111_s1, 1024 }
  0x14   : > { %p1593_p12 = scmp.ne.s32.totalorder %s2111_s1, %s1592_s8  ;;  %p1599_p5 = scmp.lt.u32.totalorder %s1592_s8, %s2111_s1 }
  0x15   : > { %p1833_p11 = pnand %p1499_p9, %p1804_p1 }
  0x17   : > { %p1594_p13 = pneg %p1833_p11 }
  0x19   : > { %p1595_p0 = pnand %p1594_p13, %p1593_p12 }
  0x1b   : > { %p1596_p3 = pneg %p1595_p0 }
  0x1d   : > { %p1601_p7 = pnand %p1599_p5, %p1596_p3 }
  0x1f   : > { %1604 = shalt.err (!%p1601_p7)
}
  0x20   : > { %s1605_s13 = scalar_lea.vmem %s198_s29, 1024  ;;  %p1613_p1 = scmp.lt.s32.totalorder %s198_s29, %s198_s29 }
  0x21   : > { %p1606_p9 = scmp.ne.s32.totalorder %s198_s29, %s1605_s13  ;;  %p1614_p4 = scmp.lt.s32.totalorder %s1605_s13, %s1605_s13 }
  0x23   : > { %p1608_p10 = pnand %p1606_p9, %p1594_p13  ;;  %p1615_p8 = por %p1614_p4, %p1613_p1 }
  0x25   : > { %p1609_p6 = pneg %p1608_p10 }
  0x27   : > { %p1616_p2 = pnand %p1615_p8, %p1609_p6 }
  0x29   : > { %1619 = shalt.err (!%p1616_p2)
}
  0x2a   : > { %s1739_s14 = smov 64   ;;  %s1740_s21 = smov 4  }
  0x2b   : > { %1502 = dma.hbm_to_vmem [thread:$0]  (!%p1833_p11), %s2111_s1, 1024, %s198_s29, [#allocation7], %s1739_s14, %s1739_s14, %s1740_s21  }
  0x2c   : > { %p42_p1 = scmp.ge.s32.totalorder %s40_s5, 2  ;;  %s49_s6 = sadd.s32 1, %s1724_s17 }
  0x2d   : > { %p56_p2 = scmp.ne.s32.totalorder %s1724_s17, %s1720_s16  ;;  %p57_p4 = scmp.eq.s32.totalorder %s1736_s20, 0 }
  0x2e   : > { %s2140_s5 = smov (%p42_p1, %s40_s5), 0  ;;  %p2126_p8 = scmp.ne.s32.totalorder %s2120_s24, 0 }
  0x2f   : > { %p1863_p6 = por %p57_p4, %p56_p2  ;;  %s44_s8 = ssub.s32 %s1732_s19, %s2140_s5 }
  0x30   : > { %p1869_p10 = por %p2126_p8, %p56_p2  ;;  %p1512_p12 = scmp.lt.s32.totalorder %s1736_s20, 2 }
  0x31   : > { %p47_p11 = scmp.eq.s32.totalorder %s44_s8, 0  ;;  %s223_s29 = sand.u32 1, %s1724_s17  }
  0x32   : > { %s1204_s9 = sshll.u32 %s223_s29, 7  ;;  %s1274_s11 = sshll.u32 %s1732_s19, 11 }
  0x33   : > { %s1878_s10 = scalar_select %p47_p11, %s1724_s17, %s49_s6  }
  0x34   : > { %s1884_s22 = scalar_lea.hbm %s2110_s0, %s1274_s11  ;;  %s227_s24 = scalar_lea.vmem [#allocation3], %s1204_s9 }
  0x35   : > { %s235_s28 = sshll.u32 %s227_s24, 4  ;;  %p1890_p13 = pnand %p1512_p12, %p1863_p6  ;;  %s1886_s28 = int_to_ptr.vmem [resolvable:$true] %s235_s28 }
  0x36   : > { %s1894_s6 = scalar_lea.sflag [#allocation4], %s223_s29  ;;  %s1620_s12 = scalar_lea.hbm %s1884_s22, 2048 }
  0x37   : > { %p1621_p0 = scmp.ne.s32.totalorder %s1884_s22, %s1620_s12  ;;  %p1622_p3 = pneg %p1890_p13 }
  0x38   : > { %s1625_s7 = scalar_lea.hbm %s2110_s0, 4096  ;;  %p1626_p9 = scmp.lt.u32.totalorder %s1884_s22, %s2110_s0 }
  0x39   : > { %p1623_p5 = pnand %p1622_p3, %p1621_p0  ;;  %p1627_p1 = scmp.lt.u32.totalorder %s1625_s7, %s1620_s12 }
  0x3a   : > { %p1629_p4 = scmp.lt.u32.totalorder %s1620_s12, %s1884_s22 }
  0x3b   : > { %p1624_p7 = pneg %p1623_p5  ;;  %p1628_p2 = por %p1627_p1, %p1626_p9 }
  0x3d   : > { %p1630_p6 = por %p1629_p4, %p1628_p2 }
  0x3f   : > { %p1631_p8 = pnand %p1630_p6, %p1624_p7 }
  0x41   : > { %1634 = shalt.err (!%p1631_p8)
}
  0x42   : > { %s1635_s29 = scalar_lea.vmem %s1886_s28, 2048  ;;  %s1741_s9 = smov [#allocation3]  }
  0x43   : > { %p1636_p12 = scmp.ne.s32.totalorder %s1886_s28, %s1635_s29  ;;  %s1640_s11 = sshll.u32 %s1741_s9, 4  ;;  %s1641_s11 = int_to_ptr.vmem [resolvable:$false] %s1640_s11 }
  0x44   : > { %s1642_s13 = scalar_lea.vmem %s1641_s11, 4096  ;;  %p1643_p5 = scmp.lt.s32.totalorder %s1886_s28, %s1641_s11 }
  0x45   : > { %p1638_p11 = pnand %p1636_p12, %p1622_p3  ;;  %p1644_p9 = scmp.lt.s32.totalorder %s1642_s13, %s1635_s29 }
  0x47   : > { %p1639_p0 = pneg %p1638_p11  ;;  %p1645_p1 = por %p1644_p9, %p1643_p5 }
  0x49   : > { %p1646_p2 = pnand %p1645_p1, %p1639_p0 }
  0x4b   : > { %1649 = shalt.err (!%p1646_p2)
}
  0x4c   : > { %1506 = dma.hbm_to_vmem [thread:$0]  (!%p1890_p13), %s1884_s22, 2048, %s1886_s28, %s1894_s6, %s1739_s14, %s1739_s14, %s1740_s21  }
  0x4d   : > { %p2129_p3 = scmp.ne.s32.totalorder %s2123_s27, 0 }
  0x4e   : > { %s1928_s12 = sand.u32 (!%p2129_p3), 1, %s1720_s16   ;;  %p2130_p7 = scmp.ne.s32.totalorder (!%p2129_p3), %s2121_s25, 0 }
  0x4f   : > { %247 = sbr.rel (%p2129_p3) target bundleno = 383 (0x17f), region = 36  ;;  %s1208_s7 = sshll.u32 (!%p2129_p3), %s1928_s12, 7 }
  0x50   : > { %s250_s24 = scalar_lea.sflag (!%p2129_p3), [#allocation4], %s1928_s12  ;;  %s1934_s8 = scalar_lea.vmem (!%p2129_p3), [#allocation3], %s1208_s7 }
  0x56   : > { %1703 = dma.done.wait (%p2130_p7), %s250_s24, 2048  }
  0x57   : > { %1705 = vsyncadd (%p2130_p7), %s250_s24, 4294965248  ;;  %p2131_p13 = scmp.ne.s32.totalorder %s2119_s23, 0 }
  0x59   : > { %1707 = dma.done.wait (%p2131_p13), [#allocation7], 1024  }
  0x5a   : > { %1709 = vsyncadd (%p2131_p13), [#allocation7], 4294966272  ;;  %v1568_v0 = vld [vmem:[#allocation6] sm:$0xff]   ;;  %v1569_v1 = vld [vmem:[#allocation6 + $0x8] sm:$0xff]   ;;  %s1988_s21 = scalar_lea.vmem [#allocation8], %s1208_s7  ;;  %s1307_s22 = sshll.u32 %s1728_s18, 11 }
  0x5b   : > { %1427 = vmatprep.subr.bf16.mxu0 %v1568_v0  ;;  %1475 = vmatprep.subr.bf16.mxu1 %v1568_v0  ;;  %v1570_v2 = vld [vmem:[#allocation6 + $0x10] sm:$0xff]   ;;  %v1571_v3 = vld [vmem:[#allocation6 + $0x18] sm:$0xff]   ;;  %v1576_v4 = vld [vmem:[%s1934_s8] sm:$0xff]   ;;  %s1071_s28 = sshll.u32 %s1988_s21, 4  ;;  %s2055_s29 = scalar_lea.hbm %s2114_s4, %s1307_s22  ;;  %s2057_s28 = int_to_ptr.vmem [resolvable:$true] %s1071_s28 }
  0x5c   : > { %1428 = vmatpush3.bf16.msra.mxu0 %v1568_v0  ;;  %1483 = vmatpush3.bf16.msra.mxu1 %v1568_v0  ;;  %v1577_v5 = vld [vmem:[%s1934_s8 + $0x40] sm:$0xff]   ;;  %v1573_v7 = vld [vmem:[#allocation6 + $0x28] sm:$0xff]   ;;  %v1574_v8 = vld [vmem:[#allocation6 + $0x30] sm:$0xff]   ;;  %s1057_s9 = scalar_lea.sflag [#allocation5], %s1928_s12  ;;  %s1650_s11 = scalar_lea.vmem %s2057_s28, 2048 }
  0x5d   : > { %1429 = vmatprep.subr.bf16.mxu0 %v1569_v1  ;;  %1476 = vmatprep.subr.bf16.mxu1 %v1569_v1  ;;  %v1572_v6 = vld [vmem:[#allocation6 + $0x20] sm:$0xff]   ;;  %v1575_v9 = vld [vmem:[#allocation6 + $0x38] sm:$0xff]   ;;  %v1578_v10 = vld [vmem:[%s1934_s8 + $0x8] sm:$0xff]   ;;  %p1651_p4 = scmp.ne.s32.totalorder %s2057_s28, %s1650_s11  ;;  %s1742_s13 = smov [#allocation8]  }
  0x5e   : > { %1443 = vmatprep.mubr.bf16.mxu0 %v1576_v4  ;;  %1459 = vmatprep.mubr.bf16.mxu1 %v1577_v5  ;;  %v1579_v11 = vld [vmem:[%s1934_s8 + $0x48] sm:$0xff]   ;;  %v1580_v12 = vld [vmem:[%s1934_s8 + $0x10] sm:$0xff]   ;;  %v1582_v14 = vld [vmem:[%s1934_s8 + $0x18] sm:$0xff]   ;;  %s1654_s7 = sshll.u32 %s1742_s13, 4  ;;  %s1655_s7 = int_to_ptr.vmem [resolvable:$false] %s1654_s7 }
  0x5f   : > { %v1581_v13 = vld [vmem:[%s1934_s8 + $0x50] sm:$0xff]   ;;  %v1583_v15 = vld [vmem:[%s1934_s8 + $0x58] sm:$0xff]   ;;  %v1584_v16 = vld [vmem:[%s1934_s8 + $0x20] sm:$0xff]   ;;  %p1652_p6 = pnand %p1651_p4, %p1869_p10  ;;  %s1656_s24 = scalar_lea.vmem %s1655_s7, 4096 }
  0x60   : > { %1430 = vmatpush3.bf16.msra.mxu0 %v1569_v1  ;;  %1484 = vmatpush3.bf16.msra.mxu1 %v1569_v1  ;;  %v1585_v17 = vld [vmem:[%s1934_s8 + $0x60] sm:$0xff]   ;;  %v1586_v18 = vld [vmem:[%s1934_s8 + $0x28] sm:$0xff]   ;;  %v1588_v20 = vld [vmem:[%s1934_s8 + $0x30] sm:$0xff]   ;;  %p1657_p12 = scmp.lt.s32.totalorder %s2057_s28, %s1655_s7  ;;  %p1658_p11 = scmp.lt.s32.totalorder %s1656_s24, %s1650_s11 }
  0x61   : > { %1431 = vmatprep.subr.bf16.mxu0 %v1570_v2  ;;  %1477 = vmatprep.subr.bf16.mxu1 %v1570_v2  ;;  %v1587_v19 = vld [vmem:[%s1934_s8 + $0x68] sm:$0xff]   ;;  %v1589_v21 = vld [vmem:[%s1934_s8 + $0x70] sm:$0xff]   ;;  %v1590_v22 = vld [vmem:[%s1934_s8 + $0x38] sm:$0xff]   ;;  %p1653_p8 = pneg %p1652_p6 }
  0x62   : > { %v1591_v23 = vld [vmem:[%s1934_s8 + $0x78] sm:$0xff]   ;;  %v1963_v24 = vld [vmem:[%s2112_s2] ss:$0 sm:$0xff]  ;;  %p1659_p0 = por %p1658_p11, %p1657_p12 }
  0x63   : > { %v1970_v31 = vld [vmem:[%s2113_s3] ss:$0 sm:$0xff] }
  0x64   : > { %1432 = vmatpush3.bf16.msra.mxu0 %v1570_v2  ;;  %1485 = vmatpush3.bf16.msra.mxu1 %v1570_v2  ;;  %p1660_p5 = pnand %p1659_p0, %p1653_p8 }
  0x65   : > { %1433 = vmatprep.subr.bf16.mxu0 %v1571_v3  ;;  %1478 = vmatprep.subr.bf16.mxu1 %v1571_v3 }
  0x68   : > { %1434 = vmatpush3.bf16.msra.mxu0 %v1571_v3  ;;  %1486 = vmatpush3.bf16.msra.mxu1 %v1571_v3 }
  0x69   : > { %1435 = vmatprep.subr.bf16.mxu0 %v1572_v6  ;;  %1479 = vmatprep.subr.bf16.mxu1 %v1572_v6 }
  0x6c   : > { %1436 = vmatpush3.bf16.msra.mxu0 %v1572_v6  ;;  %1487 = vmatpush3.bf16.msra.mxu1 %v1572_v6 }
  0x6d   : > { %1437 = vmatprep.subr.bf16.mxu0 %v1573_v7  ;;  %1480 = vmatprep.subr.bf16.mxu1 %v1573_v7 }
  0x70   : > { %1438 = vmatpush3.bf16.msra.mxu0 %v1573_v7  ;;  %1488 = vmatpush3.bf16.msra.mxu1 %v1573_v7 }
  0x71   : > { %1439 = vmatprep.subr.bf16.mxu0 %v1574_v8  ;;  %1481 = vmatprep.subr.bf16.mxu1 %v1574_v8 }
  0x74   : > { %1440 = vmatpush3.bf16.msra.mxu0 %v1574_v8  ;;  %1489 = vmatpush3.bf16.msra.mxu1 %v1574_v8 }
  0x75   : > { %1441 = vmatprep.subr.bf16.mxu0 %v1575_v9  ;;  %1482 = vmatprep.subr.bf16.mxu1 %v1575_v9 }
  0x78   : > { %1442 = vmatpush3.bf16.msra.mxu0 %v1575_v9  ;;  %1490 = vmatpush3.bf16.msra.mxu1 %v1575_v9 }
  0x7b   : > { %1444 = vmatmul.mubr.bf16.vlgmr.msra.gmra.mrb[0].mxu0 %v1578_v10  ;;  %1460 = vmatmul.mubr.bf16.vlgmr.msra.gmra.mrb[0].mxu1 %v1579_v11 }
  0x7c   : > { %1447 = vmatprep.mubr.bf16.mxu0 %v1580_v12  ;;  %1463 = vmatprep.mubr.bf16.mxu1 %v1581_v13 }
  0x83   : > { %1448 = vmatmul.mubr.bf16.gmra.mrb[4].mxu0 %v1582_v14  ;;  %1464 = vmatmul.mubr.bf16.gmra.mrb[4].mxu1 %v1583_v15 }
  0x84   : > { %1451 = vmatprep.mubr.bf16.mxu0 %v1584_v16  ;;  %1467 = vmatprep.mubr.bf16.mxu1 %v1585_v17 }
  0x8b   : > { %1452 = vmatmul.mubr.bf16.gmra.mrb[8].mxu0 %v1586_v18  ;;  %1468 = vmatmul.mubr.bf16.gmra.mrb[8].mxu1 %v1587_v19 }
  0x8c   : > { %1455 = vmatprep.mubr.bf16.mxu0 %v1588_v20  ;;  %1471 = vmatprep.mubr.bf16.mxu1 %v1589_v21 }
  0x93   : > { %1456 = vmatmul.mubr.bf16.gmra.mrb[12].mxu0 %v1590_v22  ;;  %1472 = vmatmul.mubr.bf16.gmra.mrb[12].mxu1 %v1591_v23 }
 0x14e   : > { %v1445_v25 = vpop.f32.mrb[0].mxu0  ;;  %v1461_v26 = vpop.f32.mrb[0].mxu1 }
 0x14f   : > { %v827_v27 = vmul.f32 %v1445_v25, %v1963_v24  ;;  %v843_v28 = vmul.f32 %v1461_v26, %v1963_v24  ;;  %v592_v29 = vpop.f32.mrb[1].mxu0  ;;  %v656_v30 = vpop.f32.mrb[1].mxu1 }
 0x150   : > { %v825_v32 = vmul.f32 %v1963_v24, %v592_v29  ;;  %v841_v33 = vmul.f32 %v1963_v24, %v656_v30  ;;  %v1446_v34 = vpop.f32.mrb[2].mxu0  ;;  %v1462_v35 = vpop.f32.mrb[2].mxu1 }
 0x151   : > { %v828_v36 = vmul.f32 %v1446_v34, %v1963_v24  ;;  %v844_v37 = vmul.f32 %v1462_v35, %v1963_v24  ;;  %v595_v38 = vpop.f32.mrb[3].mxu0  ;;  %v659_v39 = vpop.f32.mrb[3].mxu1  ;;  %v866_v42 = vadd.f32 %v1970_v31, %v827_v27  ;;  %v882_v43 = vadd.f32 %v1970_v31, %v843_v28 }
 0x152   : > { %v826_v40 = vmul.f32 %v1963_v24, %v595_v38  ;;  %v842_v41 = vmul.f32 %v1963_v24, %v659_v39  ;;  %v864_v46 = vadd.f32 %v1970_v31, %v825_v32  ;;  %v880_v47 = vadd.f32 %v1970_v31, %v841_v33 }
 0x153   : > { %v867_v44 = vadd.f32 %v1970_v31, %v828_v36  ;;  %v883_v45 = vadd.f32 %v1970_v31, %v844_v37 }
 0x154   : > { %v865_v48 = vadd.f32 %v1970_v31, %v826_v40  ;;  %v881_v49 = vadd.f32 %v1970_v31, %v842_v41 }
 0x155   : > { %v1316_v50 = vpack.c.bf16 %v867_v44, %v866_v42  ;;  %v1356_v51 = vpack.c.bf16 %v883_v45, %v882_v43 }
 0x156   : > { %v1311_v52 = vpack.c.bf16 %v865_v48, %v864_v46  ;;  %v1351_v53 = vpack.c.bf16 %v881_v49, %v880_v47  ;;  %v1449_v54 = vpop.f32.mrb[4].mxu0  ;;  %v1465_v55 = vpop.f32.mrb[4].mxu1 }
 0x157   : > { %1388 = vst [vmem:[%s1988_s21 + $0x8] sm:$0xff] %v1316_v50   ;;  %1396 = vst [vmem:[%s1988_s21 + $0x48] sm:$0xff] %v1356_v51   ;;  %v831_v56 = vmul.f32 %v1449_v54, %v1963_v24  ;;  %v847_v57 = vmul.f32 %v1465_v55, %v1963_v24  ;;  %v608_v58 = vpop.f32.mrb[5].mxu0  ;;  %v672_v59 = vpop.f32.mrb[5].mxu1 }
 0x158   : > { %1312 = vst [vmem:[%s1988_s21] sm:$0xff] %v1311_v52   ;;  %1395 = vst [vmem:[%s1988_s21 + $0x40] sm:$0xff] %v1351_v53   ;;  %v829_v60 = vmul.f32 %v1963_v24, %v608_v58  ;;  %v845_v61 = vmul.f32 %v1963_v24, %v672_v59  ;;  %v1450_v62 = vpop.f32.mrb[6].mxu0  ;;  %v1466_v63 = vpop.f32.mrb[6].mxu1 }
 0x159   : > { %v832_v0 = vmul.f32 %v1450_v62, %v1963_v24  ;;  %v848_v1 = vmul.f32 %v1466_v63, %v1963_v24  ;;  %v611_v2 = vpop.f32.mrb[7].mxu0  ;;  %v675_v3 = vpop.f32.mrb[7].mxu1  ;;  %v870_v6 = vadd.f32 %v1970_v31, %v831_v56  ;;  %v886_v7 = vadd.f32 %v1970_v31, %v847_v57 }
 0x15a   : > { %v830_v4 = vmul.f32 %v1963_v24, %v611_v2  ;;  %v846_v5 = vmul.f32 %v1963_v24, %v675_v3  ;;  %v868_v10 = vadd.f32 %v1970_v31, %v829_v60  ;;  %v884_v11 = vadd.f32 %v1970_v31, %v845_v61 }
 0x15b   : > { %v871_v8 = vadd.f32 %v1970_v31, %v832_v0  ;;  %v887_v9 = vadd.f32 %v1970_v31, %v848_v1 }
 0x15c   : > { %v869_v12 = vadd.f32 %v1970_v31, %v830_v4  ;;  %v885_v13 = vadd.f32 %v1970_v31, %v846_v5 }
 0x15d   : > { %v1326_v14 = vpack.c.bf16 %v871_v8, %v870_v6  ;;  %v1366_v15 = vpack.c.bf16 %v887_v9, %v886_v7 }
 0x15e   : > { %v1321_v16 = vpack.c.bf16 %v869_v12, %v868_v10  ;;  %v1361_v17 = vpack.c.bf16 %v885_v13, %v884_v11  ;;  %v1453_v18 = vpop.f32.mrb[8].mxu0  ;;  %v1469_v19 = vpop.f32.mrb[8].mxu1 }
 0x15f   : > { %1390 = vst [vmem:[%s1988_s21 + $0x18] sm:$0xff] %v1326_v14   ;;  %1398 = vst [vmem:[%s1988_s21 + $0x58] sm:$0xff] %v1366_v15   ;;  %v835_v20 = vmul.f32 %v1453_v18, %v1963_v24  ;;  %v851_v21 = vmul.f32 %v1469_v19, %v1963_v24  ;;  %v624_v22 = vpop.f32.mrb[9].mxu0  ;;  %v688_v23 = vpop.f32.mrb[9].mxu1 }
 0x160   : > { %1389 = vst [vmem:[%s1988_s21 + $0x10] sm:$0xff] %v1321_v16   ;;  %1397 = vst [vmem:[%s1988_s21 + $0x50] sm:$0xff] %v1361_v17   ;;  %v833_v25 = vmul.f32 %v1963_v24, %v624_v22  ;;  %v849_v26 = vmul.f32 %v1963_v24, %v688_v23  ;;  %v1454_v27 = vpop.f32.mrb[10].mxu0  ;;  %v1470_v28 = vpop.f32.mrb[10].mxu1 }
 0x161   : > { %v836_v29 = vmul.f32 %v1454_v27, %v1963_v24  ;;  %v852_v30 = vmul.f32 %v1470_v28, %v1963_v24  ;;  %v627_v32 = vpop.f32.mrb[11].mxu0  ;;  %v691_v33 = vpop.f32.mrb[11].mxu1  ;;  %v874_v36 = vadd.f32 %v1970_v31, %v835_v20  ;;  %v890_v37 = vadd.f32 %v1970_v31, %v851_v21 }
 0x162   : > { %v834_v34 = vmul.f32 %v1963_v24, %v627_v32  ;;  %v850_v35 = vmul.f32 %v1963_v24, %v691_v33  ;;  %v872_v40 = vadd.f32 %v1970_v31, %v833_v25  ;;  %v888_v41 = vadd.f32 %v1970_v31, %v849_v26 }
 0x163   : > { %v875_v38 = vadd.f32 %v1970_v31, %v836_v29  ;;  %v891_v39 = vadd.f32 %v1970_v31, %v852_v30 }
 0x164   : > { %v873_v42 = vadd.f32 %v1970_v31, %v834_v34  ;;  %v889_v43 = vadd.f32 %v1970_v31, %v850_v35 }
 0x165   : > { %v1336_v44 = vpack.c.bf16 %v875_v38, %v874_v36  ;;  %v1376_v45 = vpack.c.bf16 %v891_v39, %v890_v37 }
 0x166   : > { %v1331_v46 = vpack.c.bf16 %v873_v42, %v872_v40  ;;  %v1371_v47 = vpack.c.bf16 %v889_v43, %v888_v41  ;;  %v1457_v48 = vpop.f32.mrb[12].mxu0  ;;  %v1473_v49 = vpop.f32.mrb[12].mxu1 }
 0x167   : > { %1392 = vst [vmem:[%s1988_s21 + $0x28] sm:$0xff] %v1336_v44   ;;  %1400 = vst [vmem:[%s1988_s21 + $0x68] sm:$0xff] %v1376_v45   ;;  %v839_v50 = vmul.f32 %v1457_v48, %v1963_v24  ;;  %v855_v51 = vmul.f32 %v1473_v49, %v1963_v24  ;;  %v640_v52 = vpop.f32.mrb[13].mxu0  ;;  %v704_v53 = vpop.f32.mrb[13].mxu1 }
 0x168   : > { %1391 = vst [vmem:[%s1988_s21 + $0x20] sm:$0xff] %v1331_v46   ;;  %1399 = vst [vmem:[%s1988_s21 + $0x60] sm:$0xff] %v1371_v47   ;;  %v837_v54 = vmul.f32 %v1963_v24, %v640_v52  ;;  %v853_v55 = vmul.f32 %v1963_v24, %v704_v53  ;;  %v1458_v56 = vpop.f32.mrb[14].mxu0  ;;  %v1474_v57 = vpop.f32.mrb[14].mxu1 }
 0x169   : > { %v840_v58 = vmul.f32 %v1458_v56, %v1963_v24  ;;  %v856_v59 = vmul.f32 %v1474_v57, %v1963_v24  ;;  %v643_v60 = vpop.f32.mrb[15].mxu0  ;;  %v707_v61 = vpop.f32.mrb[15].mxu1  ;;  %v878_v0 = vadd.f32 %v1970_v31, %v839_v50  ;;  %v894_v1 = vadd.f32 %v1970_v31, %v855_v51 }
 0x16a   : > { %v838_v62 = vmul.f32 %v1963_v24, %v643_v60  ;;  %v854_v63 = vmul.f32 %v1963_v24, %v707_v61  ;;  %v876_v4 = vadd.f32 %v1970_v31, %v837_v54  ;;  %v892_v5 = vadd.f32 %v1970_v31, %v853_v55 }
 0x16b   : > { %v879_v2 = vadd.f32 %v1970_v31, %v840_v58  ;;  %v895_v3 = vadd.f32 %v1970_v31, %v856_v59 }
 0x16c   : > { %v877_v24 = vadd.f32 %v1970_v31, %v838_v62  ;;  %v893_v6 = vadd.f32 %v1970_v31, %v854_v63 }
 0x16d   : > { %v1346_v7 = vpack.c.bf16 %v879_v2, %v878_v0  ;;  %v1386_v8 = vpack.c.bf16 %v895_v3, %v894_v1 }
 0x16e   : > { %v1341_v9 = vpack.c.bf16 %v877_v24, %v876_v4  ;;  %v1381_v10 = vpack.c.bf16 %v893_v6, %v892_v5 }
 0x16f   : > { %1394 = vst [vmem:[%s1988_s21 + $0x38] sm:$0xff] %v1346_v7   ;;  %1402 = vst [vmem:[%s1988_s21 + $0x78] sm:$0xff] %v1386_v8  }
 0x170   : > { %1393 = vst [vmem:[%s1988_s21 + $0x30] sm:$0xff] %v1341_v9   ;;  %1401 = vst [vmem:[%s1988_s21 + $0x70] sm:$0xff] %v1381_v10  }
 0x171   : > { %1663 = shalt.err (!%p1660_p5)
}
 0x172   : > { %s1664_s8 = scalar_lea.hbm %s2055_s29, 2048  ;;  %s1668_s27 = scalar_lea.hbm %s2114_s4, 4096 }
 0x173   : > { %p1665_p9 = scmp.ne.s32.totalorder %s2055_s29, %s1664_s8  ;;  %p1669_p3 = scmp.lt.u32.totalorder %s2055_s29, %s2114_s4 }
 0x174   : > { %p1670_p7 = scmp.lt.u32.totalorder %s1668_s27, %s1664_s8  ;;  %p1672_p4 = scmp.lt.u32.totalorder %s1664_s8, %s2055_s29 }
 0x175   : > { %p1666_p1 = pnand %p1665_p9, %p1869_p10 }
 0x176   : > { %p1671_p13 = por %p1670_p7, %p1669_p3 }
 0x177   : > { %p1667_p2 = pneg %p1666_p1 }
 0x178   : > { %p1673_p6 = por %p1672_p4, %p1671_p13 }
 0x17a   : > { %p1674_p8 = pnand %p1673_p6, %p1667_p2 }
 0x17c   : > { %1677 = shalt.err (!%p1674_p8)
}
 0x17d   : > { %s1743_s22 = smov 64   ;;  %s1744_s18 = smov 4  }
 0x17e   : > { %1497 = dma.vmem_to_hbm [thread:$0]  (%p1869_p10), %s2057_s28, 2048, %s2055_s29, %s1057_s9, %s1743_s22, %s1743_s22, %s1744_s18  }
 0x17f PF: > { %s1086_s6 = sand.u32 1, %s1716_s15   ;;  %p2132_p12 = scmp.ne.s32.totalorder %s2122_s26, 0 }
 0x180   : > { %p2133_p11 = scmp.ge.s32.totalorder %s1736_s20, 2  ;;  %s1087_s11 = scalar_lea.sflag [#allocation5], %s1086_s6 }
 0x182   : > { %p1508_p0 = pnand %p2133_p11, %p2132_p12 }
 0x184   : > { %1711 = dma.done.wait (!%p1508_p0), %s1087_s11, 2048  }
 0x185   : > { %1713 = vsyncadd (!%p1508_p0), %s1087_s11, 4294965248  ;;  %s21_s20 = sadd.s32 1, %s1736_s20   ;;  %s2134_s15 = smov %s1720_s16 }
 0x186   : > { %p18_p5 = scmp.ge.s32.totalorder %s21_s20, 4   ;;  %s2135_s16 = smov %s1724_s17 }
 0x187   : > { %s2136_s17 = smov %s1878_s10  ;;  %s2137_s18 = smov %s1732_s19 }
 0x188   : > { %s2138_s19 = smov %s2140_s5  ;;  %20 = sbr.rel (!%p18_p5) target bundleno = 7 (0x7), region = 100 }
 0x18f   :  { %1092 = vsyncpa [#allocation4], 1 }
 0x190   :  { %1094 = vsyncpa [#allocation4 + $0x1], 1 }
 0x191   :  { %1095 = vsyncpa [#allocation7], 1 }
 0x192   :  { %1096 = vsyncpa [#allocation5], 1 }
 0x193   :  { %1098 = vsyncpa [#allocation5 + $0x1], 1 }

</bundles_post_ra>
